<compile_context>
chip_gen: v7x
topology: tpu7x:2x2x1
jax: 0.10.0
libtpu: 0.0.40
codegen_flags: <defaults>
</compile_context>

<pallas_src>
import functools

import jax
import jax.numpy as jnp
import numpy as np
from jax.experimental import pallas as pl
from jax.experimental.pallas import tpu as pltpu


def _r8(n):
    return -(-n // 8) * 8


def _r128(n):
    return -(-n // 128) * 128


# ---------------------------------------------------------------------------
# Pallas kernel: the WHOLE forward pass (gather + all dense layers + pooling
# + log-softmax) for one batch tile of BT rows, computed transposed
# (activations are [feature, batch], batch on lanes).
# ---------------------------------------------------------------------------
def cage_kernel(gidx_ref, slab_ref, out_ref, *, m):
    f32 = jnp.float32
    P, BT = m["P"], m["BT"]
    E, PD, OE, GE = m["E"], m["PD"], m["OE"], m["GE"]
    L, Lp, Kg = m["L"], m["Lp"], m["Kg"]
    S = P + 3                       # parts..., grasp, task, obj/state
    R = S * BT                      # gather columns per tile (lane axis)

    # --- fused embedding gather: one transposed "table @ two-hot" MXU push ---
    #   columns [0, (P+1)*BT)        -> aff[left] ‖ aff[right]  (parts, grasp)
    #   columns [(P+1)*BT, (P+2)*BT) -> task_emb ‖ 0
    #   columns [(P+2)*BT, (P+3)*BT) -> obj_emb ‖ state_emb
    g = gidx_ref[...]                                          # [2, R] int32
    ga = g[0:1, :]                                             # left-half index
    gb = g[1:2, :]                                             # right-half index (-1 = none)
    vocab = jax.lax.broadcasted_iota(jnp.int32, (Kg, R), 0)    # padded lanes never match
    hot_t = jnp.where((vocab == ga) | (vocab == gb), 1.0, 0.0)  # [Kg, R], exact 0/1
    table_t = slab_ref[m["gt"]:m["gt"] + 2 * E, 0:Kg]          # [2E, Kg]
    emb_t = jnp.dot(table_t, hot_t, preferred_element_type=f32)  # [2E, R]

    nPB = (P + 1) * BT
    pe_in_t = emb_t[:, 0:nPB]                                  # parts + grasp   [2E,(P+1)BT]
    task_t = emb_t[0:E, nPB:nPB + BT]                          # [E, BT]
    objst_t = emb_t[:, nPB + BT:nPB + 2 * BT]                  # obj ‖ state     [2E, BT]

    # --- PartEncoder over every part AND the grasp in a single matmul ---------
    wp_t = slab_ref[m["wp"]:m["wp"] + PD, 0:2 * E]
    bp_t = slab_ref[m["bp"]:m["bp"] + PD, 0:1]
    pe_t = jnp.maximum(jnp.dot(wp_t, pe_in_t, preferred_element_type=f32) + bp_t, 0.0)

    # max-pool over parts: pure-VPU maximum of lane-aligned BT-wide blocks.
    # (Running max keeps live values small; fine for any realistic P.)
    parts_max_t = pe_t[:, 0:BT]
    for p in range(1, P):
        parts_max_t = jnp.maximum(parts_max_t, pe_t[:, p * BT:(p + 1) * BT])
    grasp_part_t = pe_t[:, P * BT:(P + 1) * BT]

    # --- GraspEncoder ----------------------------------------------------------
    wg_t = slab_ref[m["wg"]:m["wg"] + GE, 0:PD]
    bg_t = slab_ref[m["bg"]:m["bg"] + GE, 0:1]
    grasp_enc_t = jnp.maximum(
        jnp.dot(wg_t, grasp_part_t, preferred_element_type=f32) + bg_t, 0.0)

    # --- ObjectEncoder: (obj‖state) chunk + parts chunk of the split weight ----
    wo1_t = slab_ref[m["wo1"]:m["wo1"] + OE, 0:2 * E]
    wo2_t = slab_ref[m["wo2"]:m["wo2"] + OE, 0:PD]
    bo_t = slab_ref[m["bo"]:m["bo"] + OE, 0:1]
    obj_enc_t = jnp.maximum(
        jnp.dot(wo1_t, objst_t, preferred_element_type=f32)
        + jnp.dot(wo2_t, parts_max_t, preferred_element_type=f32)
        + bo_t, 0.0)

    # --- final fc on concat(task, obj_enc, grasp_enc): chunked dots ------------
    wf1_t = slab_ref[m["wf1"]:m["wf1"] + Lp, 0:E]
    wf2_t = slab_ref[m["wf2"]:m["wf2"] + Lp, 0:OE]
    wf3_t = slab_ref[m["wf3"]:m["wf3"] + Lp, 0:GE]
    bf_t = slab_ref[m["bf"]:m["bf"] + Lp, 0:1]
    logits_t = (jnp.dot(wf1_t, task_t, preferred_element_type=f32)
                + jnp.dot(wf2_t, obj_enc_t, preferred_element_type=f32)
                + jnp.dot(wf3_t, grasp_enc_t, preferred_element_type=f32)
                + bf_t)                                        # [Lp, BT] (pad rows are 0)

    # --- log-softmax over classes (sublane axis), excluding the Lp-L pad rows --
    row = jax.lax.broadcasted_iota(jnp.int32, (Lp, BT), 0)
    lm = jnp.where(row < L, logits_t, -jnp.inf)
    mx = jnp.max(lm, axis=0, keepdims=True)
    lse = jnp.log(jnp.sum(jnp.exp(lm - mx), axis=0, keepdims=True)) + mx
    out_ref[...] = logits_t - lse                              # lane-dense [Lp, BT] store


# ---------------------------------------------------------------------------
# Parameter construction & packing (done once, like weight preprocessing).
# ---------------------------------------------------------------------------
def make_params(key, cfg):
    def dense(k, fan_in, fan_out):
        kw, kb = jax.random.split(k)
        return (jax.random.normal(kw, (fan_in, fan_out), jnp.float32) * 0.1,
                jax.random.normal(kb, (1, fan_out), jnp.float32) * 0.1)

    keys = jax.random.split(key, 9)
    E = cfg["emb_dim"]
    p = {}
    p["aff_emb"] = (jax.random.normal(keys[0], (cfg["aff_vocab"], E)) * 0.1).at[0].set(0.0)   # padding_idx=0
    p["mat_emb"] = (jax.random.normal(keys[1], (cfg["mat_vocab"], E)) * 0.1).at[0].set(0.0)   # unused (original bug)
    p["task_emb"] = jax.random.normal(keys[2], (cfg["task_vocab"], E)) * 0.1
    p["obj_emb"] = jax.random.normal(keys[3], (cfg["obj_vocab"], E)) * 0.1
    p["state_emb"] = jax.random.normal(keys[4], (cfg["state_vocab"], E)) * 0.1
    p["wp"], p["bp"] = dense(keys[5], 2 * E, cfg["part_dim"])                                   # part_propagation
    p["wo"], p["bo"] = dense(keys[6], 2 * E + cfg["part_dim"], cfg["obj_enc"])                  # object_propagation
    p["wg"], p["bg"] = dense(keys[7], cfg["part_dim"], cfg["grasp_enc"])                        # grasp_propagation
    p["wf"], p["bf"] = dense(keys[8], E + cfg["obj_enc"] + cfg["grasp_enc"], cfg["label_dim"])  # fc
    return p


def pack_params(p, cfg):
    """Pack every table/weight/bias (transposed) into ONE 128-lane-wide f32 slab."""
    E = cfg["emb_dim"]
    PD, OE, GE, L = cfg["part_dim"], cfg["obj_enc"], cfg["grasp_enc"], cfg["label_dim"]
    Va, Vt, Vo, Vs = cfg["aff_vocab"], cfg["task_vocab"], cfg["obj_vocab"], cfg["state_vocab"]

    # gather table lanes: left half = [aff; task; obj], right half = [aff; state]
    off_task, off_obj = Va, Va + Vt
    off_aff_r = Va + Vt + Vo
    off_state_r = off_aff_r + Va
    VT = off_state_r + Vs
    Kg = _r128(VT)                 # 128-padded vocab lanes (pad lanes never match any index)
    Lp = _r8(L)
    NW = max(128, Kg)              # slab lane width: dense full-row DMA, lane-dense output

    o_gt = 0
    o_wp = _r8(2 * E)
    o_wg = o_wp + _r8(PD)
    o_wo1 = o_wg + _r8(GE)
    o_wo2 = o_wo1 + _r8(OE)
    o_wf1 = o_wo2 + _r8(OE)
    o_wf2 = o_wf1 + Lp
    o_wf3 = o_wf2 + Lp
    o_bp = o_wf3 + Lp
    o_bg = o_bp + _r8(PD)
    o_bo = o_bg + _r8(GE)
    o_bf = o_bo + _r8(OE)
    rows = o_bf + Lp

    slab = np.zeros((rows, NW), np.float32)
    aff = np.asarray(p["aff_emb"]); task = np.asarray(p["task_emb"])
    obj = np.asarray(p["obj_emb"]); state = np.asarray(p["state_emb"])
    # transposed gather table: rows 0:E = left half, rows E:2E = right half, vocab on lanes
    slab[o_gt:o_gt + E, 0:Va] = aff.T
    slab[o_gt:o_gt + E, off_task:off_task + Vt] = task.T
    slab[o_gt:o_gt + E, off_obj:off_obj + Vo] = obj.T
    slab[o_gt + E:o_gt + 2 * E, off_aff_r:off_aff_r + Va] = aff.T      # "material" col -> aff table (orig bug)
    slab[o_gt + E:o_gt + 2 * E, off_state_r:off_state_r + Vs] = state.T

    wp = np.asarray(p["wp"]); wo = np.asarray(p["wo"])
    wg = np.asarray(p["wg"]); wf = np.asarray(p["wf"])
    slab[o_wp:o_wp + PD, 0:2 * E] = wp.T
    slab[o_wg:o_wg + GE, 0:PD] = wg.T
    slab[o_wo1:o_wo1 + OE, 0:2 * E] = wo[0:2 * E].T                    # obj‖state chunk
    slab[o_wo2:o_wo2 + OE, 0:PD] = wo[2 * E:2 * E + PD].T              # parts chunk
    slab[o_wf1:o_wf1 + L, 0:E] = wf[0:E].T                             # task chunk
    slab[o_wf2:o_wf2 + L, 0:OE] = wf[E:E + OE].T                       # obj_enc chunk
    slab[o_wf3:o_wf3 + L, 0:GE] = wf[E + OE:E + OE + GE].T             # grasp_enc chunk
    slab[o_bp:o_bp + PD, 0] = np.asarray(p["bp"])[0]
    slab[o_bg:o_bg + GE, 0] = np.asarray(p["bg"])[0]
    slab[o_bo:o_bo + OE, 0] = np.asarray(p["bo"])[0]
    slab[o_bf:o_bf + L, 0] = np.asarray(p["bf"])[0]

    meta = dict(E=E, PD=PD, OE=OE, GE=GE, L=L, Lp=Lp, Kg=Kg,
                gt=o_gt, wp=o_wp, wg=o_wg, wo1=o_wo1, wo2=o_wo2,
                wf1=o_wf1, wf2=o_wf2, wf3=o_wf3,
                bp=o_bp, bg=o_bg, bo=o_bo, bf=o_bf,
                off_task=off_task, off_obj=off_obj,
                off_aff_r=off_aff_r, off_state_r=off_state_r)
    return jnp.asarray(slab), meta


# ---------------------------------------------------------------------------
# Per-call wrapper: int-only index construction + pallas_call.
# ---------------------------------------------------------------------------
def build_gather_indices(x, m, BT):
    """Lane-dense int32 [2, nT*S*BT]; per tile columns are segment-major,
    batch-minor (parts..., grasp, task, obj/state), batch on the lane axis."""
    Bp = x.shape[0]                       # already padded to a multiple of BT
    P = (x.shape[1] - 5) // 2
    S = P + 3
    nT = Bp // BT
    xi = x.astype(jnp.int32)
    parts = xi[:, 5:].reshape(Bp, P, 2)
    a = jnp.concatenate([
        parts[:, :, 0],                       # part affordance rows   (left half)
        xi[:, 3:4],                           # grasp affordance       (left half)
        xi[:, 0:1] + m["off_task"],           # task embedding lane
        xi[:, 1:2] + m["off_obj"],            # object embedding lane
    ], axis=1)                                # [Bp, S]
    b = jnp.concatenate([
        parts[:, :, 1] + m["off_aff_r"],      # "material" col -> aff table (original bug)
        xi[:, 4:5] + m["off_aff_r"],
        jnp.full((Bp, 1), -1, jnp.int32),     # task: no right-half hit
        xi[:, 2:3] + m["off_state_r"],        # state embedding lane (right half)
    ], axis=1)                                # [Bp, S]
    ab = jnp.stack([a, b], axis=0)                           # [2, Bp, S]
    ab = ab.reshape(2, nT, BT, S).transpose(0, 1, 3, 2)      # [2, nT, S, BT]
    return ab.reshape(2, nT * S * BT)


def cage_forward(x, slab, m, BT=None):
    B, C = x.shape
    P = (C - 5) // 2
    assert P >= 1
    if BT is None:
        # BT is a multiple of 128; for big batches aim for ~2 tiles (one per v7x TC),
        # capped at 512 rows so activations stay a few MiB.
        BT = min(512, max(128, _r128(-(-B // 2))))
    Bp = _r8(0) + -(-B // BT) * BT
    if Bp != B:
        # pad rows are all-zero indices (valid: padding_idx 0 / vocab entry 0); discarded below
        x = jnp.concatenate([x, jnp.zeros((Bp - B, C), x.dtype)], axis=0)
    nT = Bp // BT
    S = P + 3
    R = S * BT
    gidx = build_gather_indices(x, m, BT)
    mm = dict(m, P=P, BT=BT)
    out_t = pl.pallas_call(
        functools.partial(cage_kernel, m=mm),
        out_shape=jax.ShapeDtypeStruct((m["Lp"], Bp), jnp.float32),
        grid=(nT,),
        in_specs=[
            pl.BlockSpec((2, R), lambda i: (0, i)),        # per-tile gather indices (lane-dense)
            pl.BlockSpec(slab.shape, lambda i: (0, 0)),    # packed params: VMEM-resident
        ],
        out_specs=pl.BlockSpec((m["Lp"], BT), lambda i: (0, i)),   # lane-dense logits block
        compiler_params=pltpu.CompilerParams(
            dimension_semantics=("parallel",),             # shards tiles across TCs (v7x)
            vmem_limit_bytes=32 * 1024 * 1024),            # explicit headroom for v7x's 64 MiB
    )(gidx, slab)
    # (slab index_map is constant; double-buffering it costs ~100 KB, so no Buffered(1) needed)
    return out_t[:m["L"], :B].T                            # -> [B, L]


# ---------------------------------------------------------------------------
# Pure-JAX reference mirroring the PyTorch forward (for verification).
# ---------------------------------------------------------------------------
def reference_forward(x, p):
    B = x.shape[0]
    P = (x.shape[1] - 5) // 2
    aff = p["aff_emb"]
    tasks, objc, states = x[:, 0], x[:, 1], x[:, 2]
    grasps = x[:, 3:5]
    parts = x[:, 5:].reshape(B, P, 2)

    def part_encode(idx):   # idx [..., 2] -> [..., part_dim]; aff table used twice (bug)
        e = jnp.concatenate([aff[idx[..., 0]], aff[idx[..., 1]]], axis=-1)
        return jax.nn.relu(e @ p["wp"] + p["bp"])

    parts_max = jnp.max(part_encode(parts), axis=1)
    grasp_enc = jax.nn.relu(part_encode(grasps) @ p["wg"] + p["bg"])
    obj_in = jnp.concatenate([p["obj_emb"][objc], p["state_emb"][states], parts_max], axis=1)
    obj_enc = jax.nn.relu(obj_in @ p["wo"] + p["bo"])
    fc_in = jnp.concatenate([p["task_emb"][tasks], obj_enc, grasp_enc], axis=1)
    logits = fc_in @ p["wf"] + p["bf"]
    return jax.nn.log_softmax(logits, axis=1)


if __name__ == "__main__":
    cfg = dict(aff_vocab=12, mat_vocab=10, task_vocab=6, obj_vocab=7, state_vocab=5,
               emb_dim=8, part_dim=16, obj_enc=16, grasp_enc=16, label_dim=10)
    B, P = 16, 3   # batch is padded to one 128-row lane-dense tile internally

    key = jax.random.PRNGKey(0)
    kx, kp = jax.random.split(key)
    params = make_params(kp, cfg)
    slab, meta = pack_params(params, cfg)

    ks = jax.random.split(kx, 4)
    tasks = jax.random.randint(ks[0], (B, 1), 0, cfg["task_vocab"])
    objs = jax.random.randint(ks[1], (B, 1), 0, cfg["obj_vocab"])
    states = jax.random.randint(ks[2], (B, 1), 0, cfg["state_vocab"])
    # grasp + part columns index the affordance table (incl. the "material"
    # column, reproducing the original code's table aliasing)
    rest = jax.random.randint(ks[3], (B, 2 + 2 * P), 0, cfg["aff_vocab"])
    x = jnp.concatenate([tasks, objs, states, rest], axis=1).astype(jnp.int32)  # [16, 11]

    fwd = jax.jit(functools.partial(cage_forward, slab=slab, m=meta))
    out = jax.block_until_ready(fwd(x))

    ref = jax.block_until_ready(reference_forward(x, params))
    np.testing.assert_allclose(np.asarray(out), np.asarray(ref), rtol=1e-5, atol=1e-5)

    print("KERNEL_OK")
</pallas_src>

<mosaic_0001>
module attributes {stable_mosaic.version = 11 : i64} {
  func.func @cage_kernel(%arg0: i32, %arg1: memref<2x768xi32, #tpu.memory_space<vmem>>, %arg2: memref<192x128xf32, #tpu.memory_space<vmem>>, %arg3: memref<16x128xf32, #tpu.memory_space<vmem>>) attributes {dimension_semantics = [#tpu.dimension_semantics<parallel>], iteration_bounds = array<i64: 1>, scalar_prefetch = 0 : i64, scratch_operands = 0 : i64, tpu.core_type = #tpu.core_type<tc>, window_params = [{transform_indices = @transform_0, window_bounds = array<i64: 2, 768>}, {pipeline_mode = #tpu.pipeline_mode<synchronous>, transform_indices = @transform_1, window_bounds = array<i64: 192, 128>}, {transform_indices = @transform_2, window_bounds = array<i64: 16, 128>}]} {
    %c0 = arith.constant 0 : index
    %c0_0 = arith.constant 0 : index
    %0 = vector.load %arg1[%c0, %c0_0] : memref<2x768xi32, #tpu.memory_space<vmem>>, vector<2x768xi32>
    %1 = vector.extract_strided_slice %0 {offsets = [0, 0], sizes = [1, 768], strides = [1, 1]} : vector<2x768xi32> to vector<1x768xi32>
    %2 = vector.extract_strided_slice %0 {offsets = [1, 0], sizes = [1, 768], strides = [1, 1]} : vector<2x768xi32> to vector<1x768xi32>
    %3 = tpu.iota {dimensions = array<i32: 0>} : vector<128x768xi32>
    %4 = vector.broadcast %1 : vector<1x768xi32> to vector<128x768xi32>
    %5 = arith.cmpi eq, %3, %4 : vector<128x768xi32>
    %6 = vector.broadcast %2 : vector<1x768xi32> to vector<128x768xi32>
    %7 = arith.cmpi eq, %3, %6 : vector<128x768xi32>
    %8 = arith.ori %5, %7 : vector<128x768xi1>
    %cst = arith.constant 1.000000e+00 : f32
    %cst_1 = arith.constant 0.000000e+00 : f32
    %9 = vector.broadcast %cst : f32 to vector<128x768xf32>
    %10 = vector.broadcast %cst_1 : f32 to vector<128x768xf32>
    %11 = arith.select %8, %9, %10 : vector<128x768xi1>, vector<128x768xf32>
    %c0_2 = arith.constant 0 : index
    %c0_3 = arith.constant 0 : index
    %12 = vector.load %arg2[%c0_2, %c0_3] : memref<192x128xf32, #tpu.memory_space<vmem>>, vector<16x128xf32>
    %cst_4 = arith.constant dense<0.000000e+00> : vector<16x768xf32>
    %13 = tpu.matmul %12, %11, %cst_4 {dimension_numbers = #tpu.dot_dimension_numbers<[1], [0], [0], [1], [0, 0, 1, 1], [], []>} : vector<16x128xf32>, vector<128x768xf32>, vector<16x768xf32> -> vector<16x768xf32>
    %14 = vector.extract_strided_slice %13 {offsets = [0, 0], sizes = [16, 512], strides = [1, 1]} : vector<16x768xf32> to vector<16x512xf32>
    %15 = vector.extract_strided_slice %13 {offsets = [0, 512], sizes = [8, 128], strides = [1, 1]} : vector<16x768xf32> to vector<8x128xf32>
    %16 = vector.extract_strided_slice %13 {offsets = [0, 640], sizes = [16, 128], strides = [1, 1]} : vector<16x768xf32> to vector<16x128xf32>
    %c16 = arith.constant 16 : index
    %c0_5 = arith.constant 0 : index
    %17 = vector.load %arg2[%c16, %c0_5] : memref<192x128xf32, #tpu.memory_space<vmem>>, vector<16x16xf32>
    %c128 = arith.constant 128 : index
    %c0_6 = arith.constant 0 : index
    %18 = vector.load %arg2[%c128, %c0_6] : memref<192x128xf32, #tpu.memory_space<vmem>>, vector<16x1xf32>
    %cst_7 = arith.constant dense<0.000000e+00> : vector<16x512xf32>
    %19 = tpu.matmul %17, %14, %cst_7 {dimension_numbers = #tpu.dot_dimension_numbers<[1], [0], [0], [1], [0, 0, 1, 1], [], []>} : vector<16x16xf32>, vector<16x512xf32>, vector<16x512xf32> -> vector<16x512xf32>
    %20 = vector.broadcast %18 : vector<16x1xf32> to vector<16x512xf32>
    %21 = arith.addf %19, %20 : vector<16x512xf32>
    %cst_8 = arith.constant 0.000000e+00 : f32
    %22 = vector.broadcast %cst_8 : f32 to vector<16x512xf32>
    %23 = arith.maximumf %21, %22 : vector<16x512xf32>
    %24 = vector.extract_strided_slice %23 {offsets = [0, 0], sizes = [16, 128], strides = [1, 1]} : vector<16x512xf32> to vector<16x128xf32>
    %25 = vector.extract_strided_slice %23 {offsets = [0, 128], sizes = [16, 128], strides = [1, 1]} : vector<16x512xf32> to vector<16x128xf32>
    %26 = arith.maximumf %24, %25 : vector<16x128xf32>
    %27 = vector.extract_strided_slice %23 {offsets = [0, 256], sizes = [16, 128], strides = [1, 1]} : vector<16x512xf32> to vector<16x128xf32>
    %28 = arith.maximumf %26, %27 : vector<16x128xf32>
    %29 = vector.extract_strided_slice %23 {offsets = [0, 384], sizes = [16, 128], strides = [1, 1]} : vector<16x512xf32> to vector<16x128xf32>
    %c32 = arith.constant 32 : index
    %c0_9 = arith.constant 0 : index
    %30 = vector.load %arg2[%c32, %c0_9] : memref<192x128xf32, #tpu.memory_space<vmem>>, vector<16x16xf32>
    %c144 = arith.constant 144 : index
    %c0_10 = arith.constant 0 : index
    %31 = vector.load %arg2[%c144, %c0_10] : memref<192x128xf32, #tpu.memory_space<vmem>>, vector<16x1xf32>
    %cst_11 = arith.constant dense<0.000000e+00> : vector<16x128xf32>
    %32 = tpu.matmul %30, %29, %cst_11 {dimension_numbers = #tpu.dot_dimension_numbers<[1], [0], [0], [1], [0, 0, 1, 1], [], []>} : vector<16x16xf32>, vector<16x128xf32>, vector<16x128xf32> -> vector<16x128xf32>
    %33 = vector.broadcast %31 : vector<16x1xf32> to vector<16x128xf32>
    %34 = arith.addf %32, %33 : vector<16x128xf32>
    %cst_12 = arith.constant 0.000000e+00 : f32
    %35 = vector.broadcast %cst_12 : f32 to vector<16x128xf32>
    %36 = arith.maximumf %34, %35 : vector<16x128xf32>
    %c48 = arith.constant 48 : index
    %c0_13 = arith.constant 0 : index
    %37 = vector.load %arg2[%c48, %c0_13] : memref<192x128xf32, #tpu.memory_space<vmem>>, vector<16x16xf32>
    %c64 = arith.constant 64 : index
    %c0_14 = arith.constant 0 : index
    %38 = vector.load %arg2[%c64, %c0_14] : memref<192x128xf32, #tpu.memory_space<vmem>>, vector<16x16xf32>
    %c160 = arith.constant 160 : index
    %c0_15 = arith.constant 0 : index
    %39 = vector.load %arg2[%c160, %c0_15] : memref<192x128xf32, #tpu.memory_space<vmem>>, vector<16x1xf32>
    %cst_16 = arith.constant dense<0.000000e+00> : vector<16x128xf32>
    %40 = tpu.matmul %37, %16, %cst_16 {dimension_numbers = #tpu.dot_dimension_numbers<[1], [0], [0], [1], [0, 0, 1, 1], [], []>} : vector<16x16xf32>, vector<16x128xf32>, vector<16x128xf32> -> vector<16x128xf32>
    %cst_17 = arith.constant dense<0.000000e+00> : vector<16x128xf32>
    %41 = tpu.matmul %38, %28, %cst_17 {dimension_numbers = #tpu.dot_dimension_numbers<[1], [0], [0], [1], [0, 0, 1, 1], [], []>} : vector<16x16xf32>, vector<16x128xf32>, vector<16x128xf32> -> vector<16x128xf32>
    %42 = arith.addf %40, %41 : vector<16x128xf32>
    %43 = vector.broadcast %39 : vector<16x1xf32> to vector<16x128xf32>
    %44 = arith.addf %42, %43 : vector<16x128xf32>
    %cst_18 = arith.constant 0.000000e+00 : f32
    %45 = vector.broadcast %cst_18 : f32 to vector<16x128xf32>
    %46 = arith.maximumf %44, %45 : vector<16x128xf32>
    %c80 = arith.constant 80 : index
    %c0_19 = arith.constant 0 : index
    %47 = vector.load %arg2[%c80, %c0_19] : memref<192x128xf32, #tpu.memory_space<vmem>>, vector<16x8xf32>
    %c96 = arith.constant 96 : index
    %c0_20 = arith.constant 0 : index
    %48 = vector.load %arg2[%c96, %c0_20] : memref<192x128xf32, #tpu.memory_space<vmem>>, vector<16x16xf32>
    %c112 = arith.constant 112 : index
    %c0_21 = arith.constant 0 : index
    %49 = vector.load %arg2[%c112, %c0_21] : memref<192x128xf32, #tpu.memory_space<vmem>>, vector<16x16xf32>
    %c176 = arith.constant 176 : index
    %c0_22 = arith.constant 0 : index
    %50 = vector.load %arg2[%c176, %c0_22] : memref<192x128xf32, #tpu.memory_space<vmem>>, vector<16x1xf32>
    %cst_23 = arith.constant dense<0.000000e+00> : vector<16x128xf32>
    %51 = tpu.matmul %47, %15, %cst_23 {dimension_numbers = #tpu.dot_dimension_numbers<[1], [0], [0], [1], [0, 0, 1, 1], [], []>} : vector<16x8xf32>, vector<8x128xf32>, vector<16x128xf32> -> vector<16x128xf32>
    %cst_24 = arith.constant dense<0.000000e+00> : vector<16x128xf32>
    %52 = tpu.matmul %48, %46, %cst_24 {dimension_numbers = #tpu.dot_dimension_numbers<[1], [0], [0], [1], [0, 0, 1, 1], [], []>} : vector<16x16xf32>, vector<16x128xf32>, vector<16x128xf32> -> vector<16x128xf32>
    %53 = arith.addf %51, %52 : vector<16x128xf32>
    %cst_25 = arith.constant dense<0.000000e+00> : vector<16x128xf32>
    %54 = tpu.matmul %49, %36, %cst_25 {dimension_numbers = #tpu.dot_dimension_numbers<[1], [0], [0], [1], [0, 0, 1, 1], [], []>} : vector<16x16xf32>, vector<16x128xf32>, vector<16x128xf32> -> vector<16x128xf32>
    %55 = arith.addf %53, %54 : vector<16x128xf32>
    %56 = vector.broadcast %50 : vector<16x1xf32> to vector<16x128xf32>
    %57 = arith.addf %55, %56 : vector<16x128xf32>
    %58 = tpu.iota {dimensions = array<i32: 0>} : vector<16x128xi32>
    %c10_i32 = arith.constant 10 : i32
    %59 = vector.broadcast %c10_i32 : i32 to vector<16x128xi32>
    %60 = arith.cmpi slt, %58, %59 : vector<16x128xi32>
    %cst_26 = arith.constant 0xFF800000 : f32
    %61 = vector.broadcast %cst_26 : f32 to vector<16x128xf32>
    %62 = arith.select %60, %57, %61 : vector<16x128xi1>, vector<16x128xf32>
    %cst_27 = arith.constant dense<0xFF800000> : vector<128xf32>
    %63 = vector.multi_reduction <maximumf>, %62, %cst_27 [0] : vector<16x128xf32> to vector<128xf32>
    %64 = vector.shape_cast %63 : vector<128xf32> to vector<1x128xf32>
    %65 = vector.broadcast %64 : vector<1x128xf32> to vector<16x128xf32>
    %66 = arith.subf %62, %65 : vector<16x128xf32>
    %67 = math.exp %66 : vector<16x128xf32>
    %cst_28 = arith.constant dense<0.000000e+00> : vector<128xf32>
    %68 = vector.multi_reduction <add>, %67, %cst_28 [0] : vector<16x128xf32> to vector<128xf32>
    %69 = vector.shape_cast %68 : vector<128xf32> to vector<1x128xf32>
    %70 = math.log %69 : vector<1x128xf32>
    %71 = arith.addf %70, %64 : vector<1x128xf32>
    %72 = vector.broadcast %71 : vector<1x128xf32> to vector<16x128xf32>
    %73 = arith.subf %57, %72 : vector<16x128xf32>
    %c0_29 = arith.constant 0 : index
    %c0_30 = arith.constant 0 : index
    %74 = vector.load %arg3[%c0_29, %c0_30] : memref<16x128xf32, #tpu.memory_space<vmem>>, vector<16x128xf32>
    tpu.vector_store %arg3[%c0_29, %c0_30], %73 {strides = array<i32>} : memref<16x128xf32, #tpu.memory_space<vmem>>, vector<16x128xf32>,
    return
  }
  func.func @transform_0(%arg0: i32) -> (i32, i32) {
    %c0_i32 = arith.constant 0 : i32
    %c0_i32_0 = arith.constant 0 : i32
    return %c0_i32, %arg0 : i32, i32
  }
  func.func @transform_1(%arg0: i32) -> (i32, i32) {
    %c0_i32 = arith.constant 0 : i32
    %c0_i32_0 = arith.constant 0 : i32
    %c0_i32_1 = arith.constant 0 : i32
    return %c0_i32, %c0_i32_0 : i32, i32
  }
  func.func @transform_2(%arg0: i32) -> (i32, i32) {
    %c0_i32 = arith.constant 0 : i32
    %c0_i32_0 = arith.constant 0 : i32
    return %c0_i32, %arg0 : i32, i32
  }
}

</mosaic_0001>

<bundles_post_ra>
// kernel: cage_forward.1
= control target key start
LH: loop header
LB: loop body
LE: loop exit
PB: predicated region body
PF: predicated region fallthrough
CT: control target
= control target key end

     0   :  { %v13_v0 = vlaneseq  ;;  %v1827_v1 = vmov 0.0   ;;  %v1828_v29 = vmov 1.0|1.0   ;;  %v1829_v58 = vmov 0   ;;  %s2594_s0 = inlined_call_operand.vmem [shape: s32[2,768], index: 0, kind: input, shape index: {}]   ;;  %s2595_s1 = inlined_call_operand.vmem [shape: f32[192,128], index: 1, kind: input, shape index: {}]   ;;  %s2596_s2 = inlined_call_operand.vmem [shape: f32[16,128], index: 2, kind: output, shape index: {}]  }
   0x1   :  { %576 = vmatprep.mubr.f32.mxu0 %v1827_v1  ;;  %653 = vmatprep.mubr.f32.mxu1 %v1827_v1  ;;  %v11_v3 = vld [vmem:[%s2594_s0] sm:$0xff]  ;;  %v12_v38 = vld [vmem:[%s2594_s0 + $0x8] sm:$0xf]  ;;  %v931_v60 = vld [vmem:[%s2595_s1 + $0x90] sm:$0xff] }
   0x2   :  { %v1847_v2 = vshrl.u32 %v13_v0, 7  ;;  %v2337_v55 = vld [vmem:[%s2595_s1] sm:$0xff]  ;;  %v2357_v56 = vld [vmem:[%s2595_s1 + $0x8] sm:$0xff]  ;;  %1819 = vset.pattern.permute.xlu0 %v1829_v58  ;;  %1820 = vset.pattern.permute.xlu1 %v1829_v58  ;;  %v1215_v61 = vld [vmem:[%s2595_s1 + $0xb8] sm:$0xff] }
   0x3   :  { %v744_v57 = vld [vmem:[%s2595_s1 + $0x80] sm:$0xff]  ;;  %v745_v59 = vld [vmem:[%s2595_s1 + $0x88] sm:$0xff]  ;;  %v1026_v58 = vld [vmem:[%s2595_s1 + $0x30] sm:$0xff] }
   0x4   :  { %v1853_v4 = vsub.s32 0, %v1847_v2  ;;  %v36_v5 = vsub.s32 2, %v1847_v2  ;;  %v1857_v6 = vsub.s32 1, %v1847_v2  ;;  %v1860_v7 = vadd.s32 8, %v1847_v2  ;;  %748 = vperm.xlu0 %1819, %v744_v57   ;;  %v1029_v57 = vld [vmem:[%s2595_s1 + $0x48] sm:$0xff] }
   0x5   :  { %v180_v8 = vsub.s32 3, %v1847_v2  ;;  %v44_v9 = vsub.s32 6, %v1847_v2  ;;  %v188_v10 = vsub.s32 7, %v1847_v2  ;;  %v40_v13 = vsub.s32 4, %v1847_v2 }
   0x6   :  { %v37_v11 = vrot.slane %v11_v3, %v36_v5  ;;  %v33_v12 = vrot.slane %v11_v3, %v1853_v4  ;;  %v184_v14 = vsub.s32 5, %v1847_v2  ;;  %v177_v18 = vrot.slane %v11_v3, %v1857_v6 }
   0x7   :  { %v181_v15 = vrot.slane %v11_v3, %v180_v8  ;;  %v45_v16 = vrot.slane %v11_v3, %v44_v9  ;;  %v189_v17 = vrot.slane %v11_v3, %v188_v10  ;;  %v41_v23 = vrot.slane %v11_v3, %v40_v13  ;;  %v742_v13 = vld [vmem:[%s2595_s1 + $0x10] sm:$0xff] }
   0x8   :  { %v1874_v19 = vrot.slane %v37_v11, %v1853_v4  ;;  %v185_v24 = vrot.slane %v11_v3, %v184_v14  ;;  %v1894_v25 = vrot.slane %v33_v12, %v1853_v4  ;;  %v1897_v26 = vrot.slane %v177_v18, %v1857_v6  ;;  %753 = vperm.xlu0 %1819, %v745_v59   ;;  %v743_v12 = vld [vmem:[%s2595_s1 + $0x18] sm:$0xff] }
   0x9   :  { %v1877_v20 = vrot.slane %v181_v15, %v1857_v6  ;;  %v1880_v21 = vrot.slane %v45_v16, %v1853_v4  ;;  %v1883_v22 = vrot.slane %v189_v17, %v1857_v6  ;;  %v1908_v27 = vrot.slane %v41_v23, %v1853_v4  ;;  %v1027_v59 = vld [vmem:[%s2595_s1 + $0x38] sm:$0xff] }
   0xa   :  { %vm79_vm0 = vcmp.eq.s32.totalorder %v1847_v2, %v1874_v19  ;;  %vm85_vm1 = vcmp.eq.s32.totalorder %v1860_v7, %v1874_v19  ;;  %v1911_v28 = vrot.slane %v185_v24, %v1857_v6  ;;  %vm78_vm12 = vcmp.eq.s32.totalorder %v1847_v2, %v1894_v25 }
   0xb   :  { %vm223_vm2 = vcmp.eq.s32.totalorder %v1847_v2, %v1877_v20  ;;  %vm229_vm3 = vcmp.eq.s32.totalorder %v1860_v7, %v1877_v20  ;;  %vm81_vm5 = vcmp.eq.s32.totalorder %v1847_v2, %v1880_v21  ;;  %vm225_vm6 = vcmp.eq.s32.totalorder %v1847_v2, %v1883_v22 }
   0xc   :  { %vm319_vm4 = vmor %vm79_vm0, %vm223_vm2  ;;  %vm87_vm8 = vcmp.eq.s32.totalorder %v1860_v7, %v1880_v21  ;;  %vm231_vm9 = vcmp.eq.s32.totalorder %v1860_v7, %v1883_v22  ;;  %vm222_vm13 = vcmp.eq.s32.totalorder %v1847_v2, %v1897_v26  ;;  %vm84_vm15 = vcmp.eq.s32.totalorder %v1860_v7, %v1894_v25  ;;  %935 = vperm.xlu0 %1819, %v931_v60   ;;  %v1210_v60 = vld [vmem:[%s2595_s1 + $0x60] sm:$0xff] }
   0xd   :  { %vm325_vm7 = vmor %vm85_vm1, %vm229_vm3  ;;  %vm228_vm0 = vcmp.eq.s32.totalorder %v1860_v7, %v1897_v26  ;;  %v1923_v30 = vadd.s32 16, %v1847_v2  ;;  %vm80_vm3 = vcmp.eq.s32.totalorder %v1847_v2, %v1908_v27  ;;  %v1931_v31 = vadd.s32 24, %v1847_v2 }
   0xe   :  { %vm1684_vm10 = vmpackc.low %vm325_vm7, %vm319_vm4  ;;  %vm224_vm4 = vcmp.eq.s32.totalorder %v1847_v2, %v1911_v28  ;;  %vm230_vm7 = vcmp.eq.s32.totalorder %v1860_v7, %v1911_v28  ;;  %v1965_v32 = vadd.s32 32, %v1847_v2  ;;  %v1973_v33 = vadd.s32 40, %v1847_v2 }
   0xf   :  { %1685 = vmatprep.subr.msk.bf16.mxu0 %vm1684_vm10, %v1828_v29  ;;  %vm321_vm11 = vmor %vm81_vm5, %vm225_vm6  ;;  %vm86_vm6 = vcmp.eq.s32.totalorder %v1860_v7, %v1908_v27  ;;  %vm91_vm10 = vcmp.eq.s32.totalorder %v1923_v30, %v1874_v19  ;;  %v1985_v34 = vadd.s32 96, %v1847_v2  ;;  %v1992_v35 = vadd.s32 48, %v1847_v2 }
  0x10   :  { %vm327_vm14 = vmor %vm87_vm8, %vm231_vm9  ;;  %v2016_v37 = vadd.s32 104, %v1847_v2  ;;  %v53_v40 = vrot.slane %v12_v38, %v36_v5  ;;  %v2088_v41 = vadd.s32 56, %v1847_v2  ;;  %v197_v42 = vrot.slane %v12_v38, %v180_v8  ;;  %1469 = vperm.xlu0 %1819, %v1215_v61  }
  0x11   :  { %vm1716_vm1 = vmpackc.low %vm327_vm14, %vm321_vm11  ;;  %vm235_vm11 = vcmp.eq.s32.totalorder %v1923_v30, %v1877_v20  ;;  %vm241_vm14 = vcmp.eq.s32.totalorder %v1931_v31, %v1877_v20  ;;  %v49_v43 = vrot.slane %v12_v38, %v1853_v4  ;;  %v193_v44 = vrot.slane %v12_v38, %v1857_v6 }
  0x12   :  { %1717 = vmatprep.subr.msk.bf16.mxu1 %vm1716_vm1, %v1828_v29  ;;  %vm318_vm2 = vmor %vm78_vm12, %vm222_vm13  ;;  %vm97_vm13 = vcmp.eq.s32.totalorder %v1931_v31, %v1874_v19  ;;  %vm93_vm1 = vcmp.eq.s32.totalorder %v1923_v30, %v1880_v21  ;;  %v2117_v45 = vrot.slane %v53_v40, %v1853_v4  ;;  %v2120_v46 = vrot.slane %v197_v42, %v1857_v6 }
  0x13   :  { %vm324_vm5 = vmor %vm84_vm15, %vm228_vm0  ;;  %v2123_v47 = vrot.slane %v49_v43, %v1853_v4  ;;  %v2126_v48 = vrot.slane %v193_v44, %v1857_v6  ;;  %v2147_v49 = vadd.s32 64, %v1847_v2  ;;  %v2155_v50 = vadd.s32 72, %v1847_v2 }
  0x14   :  { %vm1686_vm8 = vmpackc.low %vm324_vm5, %vm318_vm2  ;;  %vm237_vm2 = vcmp.eq.s32.totalorder %v1923_v30, %v1883_v22  ;;  %vm243_vm5 = vcmp.eq.s32.totalorder %v1931_v31, %v1883_v22  ;;  %v2189_v51 = vadd.s32 80, %v1847_v2  ;;  %v2197_v52 = vadd.s32 88, %v1847_v2 }
  0x15   :  { %1687 = vmatpush1.bf16.msk.msra.mxu0 %vm1686_vm8, %v1828_v29  ;;  %vm320_vm9 = vmor %vm80_vm3, %vm224_vm4  ;;  %vm99_vm4 = vcmp.eq.s32.totalorder %v1931_v31, %v1880_v21  ;;  %vm90_vm8 = vcmp.eq.s32.totalorder %v1923_v30, %v1894_v25  ;;  %v2267_v53 = vadd.s32 112, %v1847_v2  ;;  %v2277_v54 = vadd.s32 120, %v1847_v2 }
  0x16   :  { %vm326_vm12 = vmor %vm86_vm6, %vm230_vm7 }
  0x17   :  { %vm1718_vm15 = vmpackc.low %vm326_vm12, %vm320_vm9  ;;  %vm234_vm9 = vcmp.eq.s32.totalorder %v1923_v30, %v1897_v26  ;;  %vm240_vm12 = vcmp.eq.s32.totalorder %v1931_v31, %v1897_v26 }
  0x18   :  { %1719 = vmatpush1.bf16.msk.msra.mxu1 %vm1718_vm15, %v1828_v29  ;;  %vm331_vm0 = vmor %vm91_vm10, %vm235_vm11  ;;  %vm96_vm11 = vcmp.eq.s32.totalorder %v1931_v31, %v1894_v25  ;;  %vm92_vm15 = vcmp.eq.s32.totalorder %v1923_v30, %v1908_v27 }
  0x19   :  { %vm337_vm3 = vmor %vm97_vm13, %vm241_vm14 }
  0x1a   :  { %vm1688_vm6 = vmpackc.low %vm337_vm3, %vm331_vm0  ;;  %vm236_vm0 = vcmp.eq.s32.totalorder %v1923_v30, %v1911_v28  ;;  %vm242_vm3 = vcmp.eq.s32.totalorder %v1931_v31, %v1911_v28 }
  0x1b   :  { %1689 = vmatprep.subr.msk.bf16.mxu0 %vm1688_vm6, %v1828_v29  ;;  %vm333_vm7 = vmor %vm93_vm1, %vm237_vm2  ;;  %vm98_vm2 = vcmp.eq.s32.totalorder %v1931_v31, %v1908_v27  ;;  %vm103_vm6 = vcmp.eq.s32.totalorder %v1965_v32, %v1874_v19 }
  0x1c   :  { %vm339_vm10 = vmor %vm99_vm4, %vm243_vm5 }
  0x1d   :  { %vm1720_vm13 = vmpackc.low %vm339_vm10, %vm333_vm7  ;;  %vm247_vm7 = vcmp.eq.s32.totalorder %v1965_v32, %v1877_v20  ;;  %vm253_vm10 = vcmp.eq.s32.totalorder %v1973_v33, %v1877_v20 }
  0x1e   :  { %1721 = vmatprep.subr.msk.bf16.mxu1 %vm1720_vm13, %v1828_v29  ;;  %vm330_vm14 = vmor %vm90_vm8, %vm234_vm9  ;;  %vm109_vm9 = vcmp.eq.s32.totalorder %v1973_v33, %v1874_v19  ;;  %vm111_vm13 = vcmp.eq.s32.totalorder %v1973_v33, %v1880_v21 }
  0x1f   :  { %vm336_vm1 = vmor %vm96_vm11, %vm240_vm12  ;;  %vm105_vm12 = vcmp.eq.s32.totalorder %v1965_v32, %v1880_v21 }
  0x20   :  { %vm1690_vm4 = vmpackc.low %vm336_vm1, %vm330_vm14  ;;  %vm249_vm14 = vcmp.eq.s32.totalorder %v1965_v32, %v1883_v22  ;;  %vm102_vm1 = vcmp.eq.s32.totalorder %v1965_v32, %v1894_v25 }
  0x21   :  { %1691 = vmatpush1.bf16.msk.msra.mxu0 %vm1690_vm4, %v1828_v29  ;;  %vm332_vm5 = vmor %vm92_vm15, %vm236_vm0  ;;  %vm255_vm15 = vcmp.eq.s32.totalorder %v1973_v33, %v1883_v22  ;;  %vm252_vm4 = vcmp.eq.s32.totalorder %v1973_v33, %v1897_v26 }
  0x22   :  { %vm338_vm8 = vmor %vm98_vm2, %vm242_vm3  ;;  %vm246_vm3 = vcmp.eq.s32.totalorder %v1965_v32, %v1897_v26  ;;  %vm104_vm2 = vcmp.eq.s32.totalorder %v1965_v32, %v1908_v27 }
  0x23   :  { %vm1722_vm11 = vmpackc.low %vm338_vm8, %vm332_vm5 }
  0x24   :  { %1723 = vmatpush1.bf16.msk.msra.mxu1 %vm1722_vm11, %v1828_v29  ;;  %vm2003_vm0 = vmor %vm103_vm6, %vm247_vm7  ;;  %vm295_vm7 = vcmp.eq.s32.totalorder %v1985_v34, %v1877_v20  ;;  %vm301_vm6 = vcmp.eq.s32.totalorder %v2016_v37, %v1877_v20 }
  0x25   :  { %vm349_vm5 = vmor %vm109_vm9, %vm253_vm10  ;;  %vm115_vm9 = vcmp.eq.s32.totalorder %v1992_v35, %v1874_v19  ;;  %vm265_vm10 = vcmp.eq.s32.totalorder %v2088_v41, %v1877_v20 }
  0x26   :  { %vm1692_vm11 = vmpackc.low %vm349_vm5, %vm2003_vm0 }
  0x27   :  { %1693 = vmatprep.subr.msk.bf16.mxu0 %vm1692_vm11, %v1828_v29  ;;  %vm2044_vm0 = vmor %vm105_vm12, %vm249_vm14  ;;  %vm259_vm14 = vcmp.eq.s32.totalorder %v1992_v35, %v1877_v20 }
  0x28   :  { %vm351_vm12 = vmor %vm111_vm13, %vm255_vm15  ;;  %vm248_vm13 = vcmp.eq.s32.totalorder %v1965_v32, %v1911_v28 }
  0x29   :  { %vm1724_vm11 = vmpackc.low %vm351_vm12, %vm2044_vm0 }
  0x2a   :  { %1725 = vmatprep.subr.msk.bf16.mxu1 %vm1724_vm11, %v1828_v29  ;;  %vm342_vm0 = vmor %vm102_vm1, %vm246_vm3  ;;  %vm2601_vm11 = vcmp.eq.s32.totalorder %v1973_v33, %v1894_v25  ;;  %vm110_vm1 = vcmp.eq.s32.totalorder %v1973_v33, %v1908_v27  ;;  %vm254_vm3 = vcmp.eq.s32.totalorder %v1973_v33, %v1911_v28 }
  0x2b   :  { %vm348_vm12 = vmor %vm2601_vm11, %vm252_vm4  ;;  %vm121_vm11 = vcmp.eq.s32.totalorder %v2088_v41, %v1874_v19 }
  0x2c   :  { %vm1694_vm8 = vmpackc.low %vm348_vm12, %vm342_vm0  ;;  %vm123_vm12 = vcmp.eq.s32.totalorder %v2088_v41, %v1880_v21 }
  0x2d   :  { %1695 = vmatpush1.bf16.msk.msra.mxu0 %vm1694_vm8, %v1828_v29  ;;  %vm344_vm15 = vmor %vm104_vm2, %vm248_vm13  ;;  %vm117_vm8 = vcmp.eq.s32.totalorder %v1992_v35, %v1880_v21  ;;  %vm261_vm13 = vcmp.eq.s32.totalorder %v1992_v35, %v1883_v22 }
  0x2e   :  { %vm350_vm4 = vmor %vm110_vm1, %vm254_vm3  ;;  %vm267_vm1 = vcmp.eq.s32.totalorder %v2088_v41, %v1883_v22 }
  0x2f   :  { %vm1726_vm0 = vmpackc.low %vm350_vm4, %vm344_vm15 }
  0x30   :  { %1727 = vmatpush1.bf16.msk.msra.mxu1 %vm1726_vm0, %v1828_v29  ;;  %vm355_vm2 = vmor %vm115_vm9, %vm259_vm14  ;;  %vm114_vm9 = vcmp.eq.s32.totalorder %v1992_v35, %v1894_v25  ;;  %vm258_vm14 = vcmp.eq.s32.totalorder %v1992_v35, %v1897_v26 }
  0x31   :  { %vm361_vm15 = vmor %vm121_vm11, %vm265_vm10  ;;  %vm120_vm10 = vcmp.eq.s32.totalorder %v2088_v41, %v1894_v25  ;;  %vm264_vm11 = vcmp.eq.s32.totalorder %v2088_v41, %v1897_v26 }
  0x32   :  { %vm1696_vm3 = vmpackc.low %vm361_vm15, %vm355_vm2 }
  0x33   :  { %1697 = vmatprep.subr.msk.bf16.mxu0 %vm1696_vm3, %v1828_v29  ;;  %vm357_vm4 = vmor %vm117_vm8, %vm261_vm13  ;;  %vm116_vm8 = vcmp.eq.s32.totalorder %v1992_v35, %v1908_v27  ;;  %vm260_vm13 = vcmp.eq.s32.totalorder %v1992_v35, %v1911_v28 }
  0x34   :  { %vm363_vm0 = vmor %vm123_vm12, %vm267_vm1  ;;  %vm122_vm12 = vcmp.eq.s32.totalorder %v2088_v41, %v1908_v27  ;;  %vm266_vm1 = vcmp.eq.s32.totalorder %v2088_v41, %v1911_v28 }
  0x35   :  { %vm1728_vm5 = vmpackc.low %vm363_vm0, %vm357_vm4  ;;  %vm127_vm4 = vcmp.eq.s32.totalorder %v2147_v49, %v1874_v19  ;;  %vm133_vm0 = vcmp.eq.s32.totalorder %v2155_v50, %v1874_v19 }
  0x36   :  { %1729 = vmatprep.subr.msk.bf16.mxu1 %vm1728_vm5, %v1828_v29  ;;  %vm354_vm2 = vmor %vm114_vm9, %vm258_vm14  ;;  %vm271_vm9 = vcmp.eq.s32.totalorder %v2147_v49, %v1877_v20 }
  0x37   :  { %vm360_vm15 = vmor %vm120_vm10, %vm264_vm11  ;;  %vm277_vm10 = vcmp.eq.s32.totalorder %v2155_v50, %v1877_v20 }
  0x38   :  { %vm1698_vm3 = vmpackc.low %vm360_vm15, %vm354_vm2 }
  0x39   :  { %1699 = vmatpush1.bf16.msk.msra.mxu0 %vm1698_vm3, %v1828_v29  ;;  %vm356_vm5 = vmor %vm116_vm8, %vm260_vm13  ;;  %vm129_vm8 = vcmp.eq.s32.totalorder %v2147_v49, %v1880_v21  ;;  %vm273_vm13 = vcmp.eq.s32.totalorder %v2147_v49, %v1883_v22 }
  0x3a   :  { %vm362_vm14 = vmor %vm122_vm12, %vm266_vm1  ;;  %vm135_vm12 = vcmp.eq.s32.totalorder %v2155_v50, %v1880_v21  ;;  %vm279_vm1 = vcmp.eq.s32.totalorder %v2155_v50, %v1883_v22 }
  0x3b   :  { %vm1730_vm11 = vmpackc.low %vm362_vm14, %vm356_vm5 }
  0x3c   :  { %1731 = vmatpush1.bf16.msk.msra.mxu1 %vm1730_vm11, %v1828_v29  ;;  %vm367_vm2 = vmor %vm127_vm4, %vm271_vm9  ;;  %vm126_vm4 = vcmp.eq.s32.totalorder %v2147_v49, %v1894_v25  ;;  %vm270_vm9 = vcmp.eq.s32.totalorder %v2147_v49, %v1897_v26 }
  0x3d   :  { %vm373_vm15 = vmor %vm133_vm0, %vm277_vm10  ;;  %vm132_vm0 = vcmp.eq.s32.totalorder %v2155_v50, %v1894_v25  ;;  %vm276_vm10 = vcmp.eq.s32.totalorder %v2155_v50, %v1897_v26 }
  0x3e   :  { %vm1700_vm3 = vmpackc.low %vm373_vm15, %vm367_vm2 }
  0x3f   :  { %1701 = vmatprep.subr.msk.bf16.mxu0 %vm1700_vm3, %v1828_v29  ;;  %vm369_vm5 = vmor %vm129_vm8, %vm273_vm13  ;;  %vm128_vm8 = vcmp.eq.s32.totalorder %v2147_v49, %v1908_v27  ;;  %vm272_vm13 = vcmp.eq.s32.totalorder %v2147_v49, %v1911_v28 }
  0x40   :  { %vm375_vm14 = vmor %vm135_vm12, %vm279_vm1  ;;  %vm134_vm12 = vcmp.eq.s32.totalorder %v2155_v50, %v1908_v27  ;;  %vm278_vm1 = vcmp.eq.s32.totalorder %v2155_v50, %v1911_v28 }
  0x41   :  { %vm1732_vm11 = vmpackc.low %vm375_vm14, %vm369_vm5 }
  0x42   :  { %1733 = vmatprep.subr.msk.bf16.mxu1 %vm1732_vm11, %v1828_v29  ;;  %vm366_vm2 = vmor %vm126_vm4, %vm270_vm9  ;;  %vm139_vm4 = vcmp.eq.s32.totalorder %v2189_v51, %v1874_v19  ;;  %vm283_vm9 = vcmp.eq.s32.totalorder %v2189_v51, %v1877_v20 }
  0x43   :  { %vm372_vm15 = vmor %vm132_vm0, %vm276_vm10  ;;  %vm145_vm0 = vcmp.eq.s32.totalorder %v2197_v52, %v1874_v19  ;;  %vm289_vm10 = vcmp.eq.s32.totalorder %v2197_v52, %v1877_v20 }
  0x44   :  { %vm1702_vm3 = vmpackc.low %vm372_vm15, %vm366_vm2 }
  0x45   :  { %1703 = vmatpush1.bf16.msk.msra.mxu0 %vm1702_vm3, %v1828_v29  ;;  %vm368_vm5 = vmor %vm128_vm8, %vm272_vm13  ;;  %vm141_vm8 = vcmp.eq.s32.totalorder %v2189_v51, %v1880_v21  ;;  %vm285_vm13 = vcmp.eq.s32.totalorder %v2189_v51, %v1883_v22 }
  0x46   :  { %vm374_vm14 = vmor %vm134_vm12, %vm278_vm1  ;;  %vm147_vm12 = vcmp.eq.s32.totalorder %v2197_v52, %v1880_v21  ;;  %vm291_vm1 = vcmp.eq.s32.totalorder %v2197_v52, %v1883_v22 }
  0x47   :  { %vm1734_vm11 = vmpackc.low %vm374_vm14, %vm368_vm5 }
  0x48   :  { %1735 = vmatpush1.bf16.msk.msra.mxu1 %vm1734_vm11, %v1828_v29  ;;  %vm379_vm2 = vmor %vm139_vm4, %vm283_vm9  ;;  %vm138_vm4 = vcmp.eq.s32.totalorder %v2189_v51, %v1894_v25  ;;  %vm282_vm9 = vcmp.eq.s32.totalorder %v2189_v51, %v1897_v26 }
  0x49   :  { %vm385_vm15 = vmor %vm145_vm0, %vm289_vm10  ;;  %vm144_vm0 = vcmp.eq.s32.totalorder %v2197_v52, %v1894_v25  ;;  %vm288_vm10 = vcmp.eq.s32.totalorder %v2197_v52, %v1897_v26 }
  0x4a   :  { %vm1704_vm3 = vmpackc.low %vm385_vm15, %vm379_vm2 }
  0x4b   :  { %1705 = vmatprep.subr.msk.bf16.mxu0 %vm1704_vm3, %v1828_v29  ;;  %vm381_vm5 = vmor %vm141_vm8, %vm285_vm13  ;;  %vm140_vm8 = vcmp.eq.s32.totalorder %v2189_v51, %v1908_v27  ;;  %vm284_vm13 = vcmp.eq.s32.totalorder %v2189_v51, %v1911_v28 }
  0x4c   :  { %vm387_vm14 = vmor %vm147_vm12, %vm291_vm1  ;;  %vm146_vm12 = vcmp.eq.s32.totalorder %v2197_v52, %v1908_v27  ;;  %vm290_vm1 = vcmp.eq.s32.totalorder %v2197_v52, %v1911_v28 }
  0x4d   :  { %vm1736_vm11 = vmpackc.low %vm387_vm14, %vm381_vm5 }
  0x4e   :  { %1737 = vmatprep.subr.msk.bf16.mxu1 %vm1736_vm11, %v1828_v29  ;;  %vm378_vm2 = vmor %vm138_vm4, %vm282_vm9  ;;  %vm2602_vm4 = vcmp.eq.s32.totalorder %v1985_v34, %v1874_v19 }
  0x4f   :  { %vm384_vm15 = vmor %vm144_vm0, %vm288_vm10  ;;  %vm2603_vm0 = vcmp.eq.s32.totalorder %v2016_v37, %v1874_v19 }
  0x50   :  { %vm1706_vm3 = vmpackc.low %vm384_vm15, %vm378_vm2 }
  0x51   :  { %1707 = vmatpush1.bf16.msk.msra.mxu0 %vm1706_vm3, %v1828_v29  ;;  %vm380_vm5 = vmor %vm140_vm8, %vm284_vm13  ;;  %vm2604_vm8 = vcmp.eq.s32.totalorder %v1985_v34, %v1883_v22  ;;  %vm2605_vm13 = vcmp.eq.s32.totalorder %v1985_v34, %v1880_v21 }
  0x52   :  { %vm386_vm14 = vmor %vm146_vm12, %vm290_vm1  ;;  %vm2607_vm12 = vcmp.eq.s32.totalorder %v2016_v37, %v1880_v21 }
  0x53   :  { %vm1738_vm11 = vmpackc.low %vm386_vm14, %vm380_vm5  ;;  %vm2609_vm5 = vcmp.eq.s32.totalorder %v1985_v34, %v1894_v25 }
  0x54   :  { %1739 = vmatpush1.bf16.msk.msra.mxu1 %vm1738_vm11, %v1828_v29  ;;  %vm391_vm9 = vmor %vm2602_vm4, %vm295_vm7  ;;  %vm2606_vm7 = vcmp.eq.s32.totalorder %v2016_v37, %v1883_v22  ;;  %vm2610_vm11 = vcmp.eq.s32.totalorder %v2016_v37, %v1897_v26  ;;  %vm2611_vm4 = vcmp.eq.s32.totalorder %v2016_v37, %v1894_v25 }
  0x55   :  { %vm397_vm10 = vmor %vm2603_vm0, %vm301_vm6  ;;  %vm2608_vm6 = vcmp.eq.s32.totalorder %v1985_v34, %v1897_v26 }
  0x56   :  { %vm1708_vm2 = vmpackc.low %vm397_vm10, %vm391_vm9  ;;  %vm2612_vm10 = vcmp.eq.s32.totalorder %v1985_v34, %v1911_v28 }
  0x57   :  { %1709 = vmatprep.subr.msk.bf16.mxu0 %vm1708_vm2, %v1828_v29  ;;  %vm393_vm15 = vmor %vm2605_vm13, %vm2604_vm8  ;;  %vm2613_vm2 = vcmp.eq.s32.totalorder %v1985_v34, %v1908_v27  ;;  %vm163_vm13 = vcmp.eq.s32.totalorder %v2267_v53, %v1874_v19 }
  0x58   :  { %vm399_vm1 = vmor %vm2607_vm12, %vm2606_vm7  ;;  %vm2614_vm7 = vcmp.eq.s32.totalorder %v2016_v37, %v1911_v28  ;;  %vm2615_vm12 = vcmp.eq.s32.totalorder %v2016_v37, %v1908_v27 }
  0x59   :  { %vm1740_vm3 = vmpackc.low %vm399_vm1, %vm393_vm15  ;;  %vm307_vm15 = vcmp.eq.s32.totalorder %v2267_v53, %v1877_v20 }
  0x5a   :  { %1741 = vmatprep.subr.msk.bf16.mxu1 %vm1740_vm3, %v1828_v29  ;;  %vm390_vm14 = vmor %vm2609_vm5, %vm2608_vm6  ;;  %vm169_vm3 = vcmp.eq.s32.totalorder %v2277_v54, %v1874_v19  ;;  %vm313_vm6 = vcmp.eq.s32.totalorder %v2277_v54, %v1877_v20  ;;  %v929_v19 = vld [vmem:[%s2595_s1 + $0x20] sm:$0xff] }
  0x5b   :  { %vm396_vm9 = vmor %vm2611_vm4, %vm2610_vm11  ;;  %vm165_vm11 = vcmp.eq.s32.totalorder %v2267_v53, %v1880_v21  ;;  %vm309_vm4 = vcmp.eq.s32.totalorder %v2267_v53, %v1883_v22  ;;  %v1030_v20 = vld [vmem:[%s2595_s1 + $0xa0] sm:$0xff] }
  0x5c   :  { %vm1710_vm0 = vmpackc.low %vm396_vm9, %vm390_vm14  ;;  %1196 = vperm.xlu1 %1820, %v1030_v20   ;;  %v1209_v20 = vld [vmem:[%s2595_s1 + $0x58] sm:$0xff] }
  0x5d   :  { %1711 = vmatpush1.bf16.msk.msra.mxu0 %vm1710_vm0, %v1828_v29  ;;  %vm392_vm8 = vmor %vm2613_vm2, %vm2612_vm10  ;;  %vm171_vm0 = vcmp.eq.s32.totalorder %v2277_v54, %v1880_v21  ;;  %vm315_vm10 = vcmp.eq.s32.totalorder %v2277_v54, %v1883_v22  ;;  %v932_v21 = vld [vmem:[%s2595_s1 + $0x98] sm:$0xff]  ;;  %v1214_v22 = vld [vmem:[%s2595_s1 + $0xb0] sm:$0xff] }
  0x5e   :  { %vm398_vm1 = vmor %vm2615_vm12, %vm2614_vm7  ;;  %vm168_vm12 = vcmp.eq.s32.totalorder %v2277_v54, %v1894_v25 }
  0x5f   :  { %vm1742_vm5 = vmpackc.low %vm398_vm1, %vm392_vm8  ;;  %vm312_vm1 = vcmp.eq.s32.totalorder %v2277_v54, %v1897_v26 }
  0x60   :  { %1743 = vmatpush1.bf16.msk.msra.mxu1 %vm1742_vm5, %v1828_v29  ;;  %vm403_vm14 = vmor %vm163_vm13, %vm307_vm15  ;;  %vm162_vm13 = vcmp.eq.s32.totalorder %v2267_v53, %v1894_v25  ;;  %vm306_vm15 = vcmp.eq.s32.totalorder %v2267_v53, %v1897_v26  ;;  %vm164_vm5 = vcmp.eq.s32.totalorder %v2267_v53, %v1908_v27 }
  0x61   :  { %vm409_vm9 = vmor %vm169_vm3, %vm313_vm6 }
  0x62   :  { %vm1712_vm2 = vmpackc.low %vm409_vm9, %vm403_vm14  ;;  %vm308_vm14 = vcmp.eq.s32.totalorder %v2267_v53, %v1911_v28  ;;  %vm314_vm9 = vcmp.eq.s32.totalorder %v2277_v54, %v1911_v28 }
  0x63   :  { %1713 = vmatprep.subr.msk.bf16.mxu0 %vm1712_vm2, %v1828_v29  ;;  %vm405_vm8 = vmor %vm165_vm11, %vm309_vm4  ;;  %vm170_vm4 = vcmp.eq.s32.totalorder %v2277_v54, %v1908_v27  ;;  %vm83_vm2 = vcmp.eq.s32.totalorder %v1847_v2, %v2117_v45 }
  0x64   :  { %vm411_vm7 = vmor %vm171_vm0, %vm315_vm10 }
  0x65   :  { %vm1744_vm3 = vmpackc.low %vm411_vm7, %vm405_vm8  ;;  %vm227_vm8 = vcmp.eq.s32.totalorder %v1847_v2, %v2120_v46  ;;  %vm233_vm7 = vcmp.eq.s32.totalorder %v1860_v7, %v2120_v46 }
  0x66   :  { %1745 = vmatprep.subr.msk.bf16.mxu1 %vm1744_vm3, %v1828_v29  ;;  %vm402_vm6 = vmor %vm162_vm13, %vm306_vm15  ;;  %vm89_vm15 = vcmp.eq.s32.totalorder %v1860_v7, %v2117_v45  ;;  %vm82_vm3 = vcmp.eq.s32.totalorder %v1847_v2, %v2123_v47 }
  0x67   :  { %vm408_vm11 = vmor %vm168_vm12, %vm312_vm1 }
  0x68   :  { %vm1714_vm0 = vmpackc.low %vm408_vm11, %vm402_vm6  ;;  %vm226_vm6 = vcmp.eq.s32.totalorder %v1847_v2, %v2126_v48  ;;  %vm232_vm11 = vcmp.eq.s32.totalorder %v1860_v7, %v2126_v48 }
  0x69   :  { %1715 = vmatpush1.bf16.msk.msra.mxu0 %vm1714_vm0, %v1828_v29  ;;  %vm404_vm10 = vmor %vm164_vm5, %vm308_vm14  ;;  %vm88_vm14 = vcmp.eq.s32.totalorder %v1860_v7, %v2123_v47  ;;  %vm95_vm0 = vcmp.eq.s32.totalorder %v1923_v30, %v2117_v45 }
  0x6a   :  { %vm410_vm13 = vmor %vm170_vm4, %vm314_vm9 }
  0x6b   :  { %vm1746_vm12 = vmpackc.low %vm410_vm13, %vm404_vm10  ;;  %vm239_vm10 = vcmp.eq.s32.totalorder %v1923_v30, %v2120_v46  ;;  %vm245_vm13 = vcmp.eq.s32.totalorder %v1931_v31, %v2120_v46 }
  0x6c   :  { %1747 = vmatpush1.bf16.msk.msra.mxu1 %vm1746_vm12, %v1828_v29  ;;  %577 = vmatmul.mubr.f32.vlgmr.msra.gmra.mrb[0].mxu0 %v2337_v55  ;;  %vm323_vm1 = vmor %vm83_vm2, %vm227_vm8  ;;  %vm101_vm8 = vcmp.eq.s32.totalorder %v1931_v31, %v2117_v45  ;;  %vm94_vm12 = vcmp.eq.s32.totalorder %v1923_v30, %v2123_v47 }
  0x6d   :  { %582 = vmatprep.mubr.f32.mxu0 %v1827_v1  ;;  %vm329_vm5 = vmor %vm89_vm15, %vm233_vm7 }
  0x6e   :  { %vm1748_vm4 = vmpackc.low %vm329_vm5, %vm323_vm1  ;;  %vm238_vm1 = vcmp.eq.s32.totalorder %v1923_v30, %v2126_v48  ;;  %vm244_vm5 = vcmp.eq.s32.totalorder %v1931_v31, %v2126_v48 }
  0x6f   :  { %654 = vmatmul.mubr.f32.vlgmr.msra.gmra.mrb[0].mxu1 %v2337_v55  ;;  %1749 = vmatprep.subr.msk.bf16.mxu0 %vm1748_vm4, %v1828_v29  ;;  %vm322_vm9 = vmor %vm82_vm3, %vm226_vm6  ;;  %vm100_vm6 = vcmp.eq.s32.totalorder %v1931_v31, %v2123_v47  ;;  %vm107_vm4 = vcmp.eq.s32.totalorder %v1965_v32, %v2117_v45 }
  0x70   :  { %659 = vmatprep.mubr.f32.mxu1 %v1827_v1  ;;  %583 = vmatmul.mubr.f32.gmra.mrb[2].mxu0 %v2357_v56  ;;  %vm328_vm2 = vmor %vm88_vm14, %vm232_vm11 }
  0x71   :  { %vm1750_vm15 = vmpackc.low %vm328_vm2, %vm322_vm9  ;;  %730 = vmatprep.mubr.f32.mxu0 %v1827_v1  ;;  %vm251_vm9 = vcmp.eq.s32.totalorder %v1965_v32, %v2120_v46  ;;  %vm257_vm2 = vcmp.eq.s32.totalorder %v1973_v33, %v2120_v46 }
  0x72   :  { %1751 = vmatpush1.bf16.msk.msra.mxu0 %vm1750_vm15, %v1828_v29  ;;  %vm335_vm7 = vmor %vm95_vm0, %vm239_vm10  ;;  %vm113_vm10 = vcmp.eq.s32.totalorder %v1973_v33, %v2117_v45  ;;  %vm106_vm15 = vcmp.eq.s32.totalorder %v1965_v32, %v2123_v47 }
  0x73   :  { %660 = vmatmul.mubr.f32.gmra.mrb[2].mxu1 %v2357_v56  ;;  %vm341_vm3 = vmor %vm101_vm8, %vm245_vm13 }
  0x74   :  { %vm1752_vm14 = vmpackc.low %vm341_vm3, %vm335_vm7  ;;  %833 = vmatprep.mubr.f32.mxu1 %v1827_v1  ;;  %vm250_vm7 = vcmp.eq.s32.totalorder %v1965_v32, %v2126_v48  ;;  %vm256_vm3 = vcmp.eq.s32.totalorder %v1973_v33, %v2126_v48 }
  0x75   :  { %1753 = vmatprep.subr.msk.bf16.mxu0 %vm1752_vm14, %v1828_v29  ;;  %vm334_vm11 = vmor %vm94_vm12, %vm238_vm1  ;;  %vm112_vm1 = vcmp.eq.s32.totalorder %v1973_v33, %v2123_v47  ;;  %vm119_vm14 = vcmp.eq.s32.totalorder %v1992_v35, %v2117_v45 }
  0x76   :  { %vm340_vm0 = vmor %vm100_vm6, %vm244_vm5 }
  0x77   :  { %vm1754_vm8 = vmpackc.low %vm340_vm0, %vm334_vm11  ;;  %vm263_vm11 = vcmp.eq.s32.totalorder %v1992_v35, %v2120_v46  ;;  %vm269_vm0 = vcmp.eq.s32.totalorder %v2088_v41, %v2120_v46 }
  0x78   :  { %1755 = vmatpush1.bf16.msk.msra.mxu0 %vm1754_vm8, %v1828_v29  ;;  %vm347_vm13 = vmor %vm107_vm4, %vm251_vm9  ;;  %vm125_vm9 = vcmp.eq.s32.totalorder %v2088_v41, %v2117_v45  ;;  %vm118_vm8 = vcmp.eq.s32.totalorder %v1992_v35, %v2123_v47 }
  0x79   :  { %vm353_vm12 = vmor %vm113_vm10, %vm257_vm2 }
  0x7a   :  { %vm1756_vm6 = vmpackc.low %vm353_vm12, %vm347_vm13  ;;  %vm262_vm13 = vcmp.eq.s32.totalorder %v1992_v35, %v2126_v48  ;;  %vm268_vm12 = vcmp.eq.s32.totalorder %v2088_v41, %v2126_v48 }
  0x7b   :  { %1757 = vmatprep.subr.msk.bf16.mxu0 %vm1756_vm6, %v1828_v29  ;;  %vm346_vm5 = vmor %vm106_vm15, %vm250_vm7  ;;  %vm124_vm7 = vcmp.eq.s32.totalorder %v2088_v41, %v2123_v47  ;;  %vm131_vm6 = vcmp.eq.s32.totalorder %v2147_v49, %v2117_v45 }
  0x7c   :  { %vm352_vm4 = vmor %vm112_vm1, %vm256_vm3 }
  0x7d   :  { %vm1758_vm10 = vmpackc.low %vm352_vm4, %vm346_vm5  ;;  %vm275_vm5 = vcmp.eq.s32.totalorder %v2147_v49, %v2120_v46  ;;  %vm281_vm4 = vcmp.eq.s32.totalorder %v2155_v50, %v2120_v46 }
  0x7e   :  { %1759 = vmatpush1.bf16.msk.msra.mxu0 %vm1758_vm10, %v1828_v29  ;;  %vm359_vm2 = vmor %vm119_vm14, %vm263_vm11  ;;  %vm137_vm11 = vcmp.eq.s32.totalorder %v2155_v50, %v2117_v45  ;;  %vm130_vm10 = vcmp.eq.s32.totalorder %v2147_v49, %v2123_v47 }
  0x7f   :  { %vm365_vm15 = vmor %vm125_vm9, %vm269_vm0 }
  0x80   :  { %vm1760_vm1 = vmpackc.low %vm365_vm15, %vm359_vm2  ;;  %vm274_vm2 = vcmp.eq.s32.totalorder %v2147_v49, %v2126_v48  ;;  %vm280_vm15 = vcmp.eq.s32.totalorder %v2155_v50, %v2126_v48 }
  0x81   :  { %1761 = vmatprep.subr.msk.bf16.mxu0 %vm1760_vm1, %v1828_v29  ;;  %vm358_vm3 = vmor %vm118_vm8, %vm262_vm13  ;;  %vm136_vm13 = vcmp.eq.s32.totalorder %v2155_v50, %v2123_v47  ;;  %vm143_vm1 = vcmp.eq.s32.totalorder %v2189_v51, %v2117_v45 }
  0x82   :  { %vm364_vm14 = vmor %vm124_vm7, %vm268_vm12 }
  0x83   :  { %vm1762_vm9 = vmpackc.low %vm364_vm14, %vm358_vm3  ;;  %vm287_vm3 = vcmp.eq.s32.totalorder %v2189_v51, %v2120_v46  ;;  %vm293_vm14 = vcmp.eq.s32.totalorder %v2197_v52, %v2120_v46  ;;  %v749_v23 = vpop.permute.xlu0 %748 }
  0x84   :  { %1763 = vmatpush1.bf16.msk.msra.mxu0 %vm1762_vm9, %v1828_v29  ;;  %vm371_vm0 = vmor %vm131_vm6, %vm275_vm5  ;;  %vm149_vm5 = vcmp.eq.s32.totalorder %v2197_v52, %v2117_v45  ;;  %vm142_vm9 = vcmp.eq.s32.totalorder %v2189_v51, %v2123_v47 }
  0x85   :  { %vm377_vm8 = vmor %vm137_vm11, %vm281_vm4 }
  0x86   :  { %vm1764_vm7 = vmpackc.low %vm377_vm8, %vm371_vm0  ;;  %vm286_vm0 = vcmp.eq.s32.totalorder %v2189_v51, %v2126_v48  ;;  %vm292_vm8 = vcmp.eq.s32.totalorder %v2197_v52, %v2126_v48 }
  0x87   :  { %1765 = vmatprep.subr.msk.bf16.mxu0 %vm1764_vm7, %v1828_v29  ;;  %vm370_vm12 = vmor %vm130_vm10, %vm274_vm2  ;;  %vm148_vm2 = vcmp.eq.s32.totalorder %v2197_v52, %v2123_v47  ;;  %vm155_vm7 = vcmp.eq.s32.totalorder %v1985_v34, %v2117_v45  ;;  %v754_v24 = vpop.permute.xlu0 %753 }
  0x88   :  { %vm376_vm6 = vmor %vm136_vm13, %vm280_vm15 }
  0x89   :  { %vm1766_vm11 = vmpackc.low %vm376_vm6, %vm370_vm12  ;;  %vm299_vm12 = vcmp.eq.s32.totalorder %v1985_v34, %v2120_v46  ;;  %vm305_vm6 = vcmp.eq.s32.totalorder %v2016_v37, %v2120_v46 }
  0x8a   :  { %1767 = vmatpush1.bf16.msk.msra.mxu0 %vm1766_vm11, %v1828_v29  ;;  %vm383_vm4 = vmor %vm143_vm1, %vm287_vm3  ;;  %vm161_vm3 = vcmp.eq.s32.totalorder %v2016_v37, %v2117_v45  ;;  %vm154_vm11 = vcmp.eq.s32.totalorder %v1985_v34, %v2123_v47 }
  0x8b   :  { %vm389_vm10 = vmor %vm149_vm5, %vm293_vm14 }
  0x8c   :  { %vm1768_vm13 = vmpackc.low %vm389_vm10, %vm383_vm4  ;;  %vm298_vm4 = vcmp.eq.s32.totalorder %v1985_v34, %v2126_v48  ;;  %vm304_vm10 = vcmp.eq.s32.totalorder %v2016_v37, %v2126_v48 }
  0x8d   :  { %1769 = vmatprep.subr.msk.bf16.mxu0 %vm1768_vm13, %v1828_v29  ;;  %vm382_vm15 = vmor %vm142_vm9, %vm286_vm0  ;;  %vm160_vm0 = vcmp.eq.s32.totalorder %v2016_v37, %v2123_v47 }
  0x8e   :  { %vm388_vm1 = vmor %vm148_vm2, %vm292_vm8 }
  0x8f   :  { %vm1770_vm5 = vmpackc.low %vm388_vm1, %vm382_vm15  ;;  %vm311_vm1 = vcmp.eq.s32.totalorder %v2267_v53, %v2120_v46 }
  0x90   :  { %1771 = vmatpush1.bf16.msk.msra.mxu0 %vm1770_vm5, %v1828_v29  ;;  %vm395_vm14 = vmor %vm155_vm7, %vm299_vm12  ;;  %vm167_vm7 = vcmp.eq.s32.totalorder %v2267_v53, %v2117_v45  ;;  %vm173_vm12 = vcmp.eq.s32.totalorder %v2277_v54, %v2117_v45  ;;  %vm166_vm5 = vcmp.eq.s32.totalorder %v2267_v53, %v2123_v47 }
  0x91   :  { %vm401_vm9 = vmor %vm161_vm3, %vm305_vm6  ;;  %vm317_vm3 = vcmp.eq.s32.totalorder %v2277_v54, %v2120_v46 }
  0x92   :  { %vm1772_vm2 = vmpackc.low %vm401_vm9, %vm395_vm14  ;;  %vm310_vm14 = vcmp.eq.s32.totalorder %v2267_v53, %v2126_v48  ;;  %vm316_vm9 = vcmp.eq.s32.totalorder %v2277_v54, %v2126_v48 }
  0x93   :  { %1773 = vmatprep.subr.msk.bf16.mxu0 %vm1772_vm2, %v1828_v29  ;;  %vm394_vm8 = vmor %vm154_vm11, %vm298_vm4  ;;  %vm172_vm4 = vcmp.eq.s32.totalorder %v2277_v54, %v2123_v47 }
  0x94   :  { %vm400_vm13 = vmor %vm160_vm0, %vm304_vm10 }
  0x95   :  { %vm1774_vm15 = vmpackc.low %vm400_vm13, %vm394_vm8  ;;  %vm756_vm13 = vcmask 130048  }
  0x96   :  { %1775 = vmatpush1.bf16.msk.msra.mxu0 %vm1774_vm15, %v1828_v29  ;;  %vm407_vm6 = vmor %vm167_vm7, %vm311_vm1  ;;  %vm1297_vm15 = vcmask 64512   ;;  %vm1475_vm7 = vcmp.lt.s32.totalorder %v1860_v7, 10 }
  0x97   :  { %vm413_vm11 = vmor %vm173_vm12, %vm317_vm3 }
  0x98   :  { %vm1776_vm0 = vmpackc.low %vm413_vm11, %vm407_vm6 }
  0x99   :  { %1777 = vmatprep.subr.msk.bf16.mxu0 %vm1776_vm0, %v1828_v29  ;;  %vm406_vm10 = vmor %vm166_vm5, %vm310_vm14 }
  0x9a   :  { %vm412_vm2 = vmor %vm172_vm4, %vm316_vm9 }
  0x9b   :  { %vm1778_vm8 = vmpackc.low %vm412_vm2, %vm406_vm10 }
  0x9c   :  { %1779 = vmatpush1.bf16.msk.msra.mxu0 %vm1778_vm8, %v1828_v29 }
  0x9f   :  { %731 = vmatmul.mubr.f32.vlgmr.msra.gmra.mrb[4].mxu0 %v2337_v55  ;;  %v930_v55 = vld [vmem:[%s2595_s1 + $0x28] sm:$0xff] }
  0xa0   :  { %736 = vmatprep.mubr.f32.mxu0 %v1827_v1 }
  0xa3   :  { %737 = vmatmul.mubr.f32.gmra.mrb[6].mxu0 %v2357_v56  ;;  %v1028_v56 = vld [vmem:[%s2595_s1 + $0x40] sm:$0xff] }
  0xa4   :  { %827 = vmatprep.mubr.f32.mxu0 %v1827_v1 }
  0xdb   :  { %v1197_v61 = vpop.permute.xlu1 %1196 }
 0x13f   :  { %v578_v62 = vpop.f32.mrb[0].mxu0 }
 0x140   :  { %v580_v63 = vpop.f32.mrb[1].mxu0 }
 0x142   :  { %v655_v0 = vpop.f32.mrb[0].mxu1 }
 0x143   :  { %v657_v2 = vpop.f32.mrb[1].mxu1  ;;  %v584_v3 = vpop.f32.mrb[2].mxu0 }
 0x144   :  { %v1782_v4 = vpack.c.bf16 %v584_v3, %v578_v62  ;;  %v586_v5 = vpop.f32.mrb[3].mxu0 }
 0x145   :  { %v1780_v6 = vpack.c.bf16 %v586_v5, %v580_v63 }
 0x146   :  { %v661_v8 = vpop.f32.mrb[2].mxu1 }
 0x147   :  { %v1786_v9 = vpack.c.bf16 %v661_v8, %v655_v0  ;;  %v663_v10 = vpop.f32.mrb[3].mxu1  ;;  %1781 = vmatprep.subr.bf16.mxu0 %v1780_v6  ;;  %1808 = vmatprep.subr.bf16.mxu1 %v1780_v6 }
 0x148   :  { %v1784_v11 = vpack.c.bf16 %v663_v10, %v657_v2  ;;  %1783 = vmatpush1.bf16.msra.mxu0 %v1782_v4  ;;  %1809 = vmatpush1.bf16.msra.mxu1 %v1782_v4  ;;  %v936_v2 = vpop.permute.xlu0 %935 }
 0x14a   :  { %1785 = vmatprep.subr.bf16.mxu1 %v1784_v11 }
 0x14b   :  { %1606 = vmatmul.mubr.msk.f32.vlgmr.msra.gmra.mrb[4].mxu1 %vm756_vm13, %v743_v12  ;;  %1605 = vmatmul.mubr.msk.f32.vlgmr.msra.gmra.mrb[8].mxu0 %vm756_vm13, %v742_v13 }
 0x14c   :  { %1787 = vmatpush1.bf16.msra.mxu1 %v1786_v9  ;;  %904 = vmatprep.mubr.f32.mxu1 %v1827_v1 }
 0x14f   :  { %1607 = vmatmul.mubr.msk.f32.vlgmr.msra.gmra.mrb[6].mxu1 %vm756_vm13, %v742_v13 }
 0x150   :  { %910 = vmatprep.mubr.f32.mxu1 %v1827_v1  ;;  %v1031_v1 = vld [vmem:[%s2595_s1 + $0xa8] sm:$0xff] }
 0x151   :  { %1201 = vperm.xlu1 %1820, %v1031_v1   ;;  %v1212_v1 = vld [vmem:[%s2595_s1 + $0x70] sm:$0xff] }
 0x153   :  { %1608 = vmatmul.mubr.msk.f32.gmra.mrb[8].mxu1 %vm756_vm13, %v743_v12 }
 0x154   :  { %1648 = vmatprep.mubr.msk.f32.mxu1 %vm756_vm13, %v929_v19  ;;  %v1208_v19 = vld [vmem:[%s2595_s1 + $0x50] sm:$0xff] }
 0x155   :  { %940 = vperm.xlu1 %1820, %v932_v21   ;;  %v1213_v21 = vld [vmem:[%s2595_s1 + $0x78] sm:$0xff] }
 0x159   :  { %1464 = vperm.xlu1 %1820, %v1214_v22  }
 0x172   :  { %v2525_v14 = vpop.f32.mrb[4].mxu0 }
 0x173   :  { %v734_v15 = vpop.f32.mrb[5].mxu0 }
 0x176   :  { %v738_v16 = vpop.f32.mrb[6].mxu0 }
 0x177   :  { %v739_v17 = vpop.f32.mrb[7].mxu0 }
 0x178   :  { %v1796_v18 = vpack.c.bf16 %v739_v17, %v734_v15 }
 0x1d0   :  { %v1202_v62 = vpop.permute.xlu1 %1201 }
 0x1d4   :  { %v941_v63 = vpop.permute.xlu1 %940 }
 0x21e   :  { %v835_v25 = vpop.f32.mrb[4].mxu1  ;;  %v829_v26 = vpop.f32.mrb[8].mxu0 }
 0x21f   :  { %v836_v27 = vadd.f32 %v835_v25, %v754_v24  ;;  %v830_v28 = vadd.f32 %v829_v26, %v749_v23  ;;  %v837_v29 = vpop.f32.mrb[5].mxu1  ;;  %v831_v30 = vpop.f32.mrb[9].mxu0 }
 0x220   :  { %v838_v31 = vadd.f32 %v837_v29, %v754_v24  ;;  %v832_v32 = vadd.f32 %v831_v30, %v749_v23 }
 0x221   :  { %v921_v33 = vmax.f32 %v836_v27, 0.0  ;;  %v917_v34 = vmax.f32 %v830_v28, 0.0 }
 0x222   :  { %v922_v35 = vmax.f32 %v838_v31, 0.0  ;;  %v918_v36 = vmax.f32 %v832_v32, 0.0  ;;  %v906_v37 = vpop.f32.mrb[6].mxu1 }
 0x223   :  { %v907_v38 = vadd.f32 %v906_v37, %v749_v23  ;;  %v908_v39 = vpop.f32.mrb[7].mxu1 }
 0x224   :  { %v926_v40 = vmax.f32 %v921_v33, %v922_v35  ;;  %v925_v41 = vmax.f32 %v917_v34, %v918_v36  ;;  %v909_v43 = vadd.f32 %v908_v39, %v749_v23  ;;  %v1465_v23 = vpop.permute.xlu1 %1464 }
 0x225   :  { %v919_v42 = vmax.f32 %v907_v38, 0.0 }
 0x226   :  { %v912_v44 = vpop.f32.mrb[8].mxu1  ;;  %v920_v50 = vmax.f32 %v909_v43, 0.0 }
 0x227   :  { %v927_v45 = vmax.f32 %v925_v41, %v919_v42  ;;  %v913_v46 = vadd.f32 %v912_v44, %v754_v24  ;;  %v914_v47 = vpop.f32.mrb[9].mxu1 }
 0x228   :  { %v915_v48 = vadd.f32 %v914_v47, %v754_v24 }
 0x229   :  { %v923_v49 = vmax.f32 %v913_v46, 0.0 }
 0x22a   :  { %v924_v51 = vmax.f32 %v915_v48, 0.0 }
 0x22b   :  { %v928_v52 = vmax.f32 %v926_v40, %v923_v49 }
 0x22c   :  { %v1788_v53 = vpack.c.bf16 %v924_v51, %v920_v50 }
 0x22d   :  { %v1792_v54 = vpack.c.bf16 %v928_v52, %v927_v45 }
 0x22e   :  { %1789 = vmatprep.subr.bf16.mxu1 %v1788_v53 }
 0x22f   :  { %1791 = vmatpush3.bf16.msra.mxu1 %v1788_v53 }
 0x230   :  { %1793 = vmatprep.subr.bf16.mxu1 %v1792_v54 }
 0x232   :  { %1649 = vmatmul.mubr.msk.f32.vlgmr.msra.gmra.mrb[10].mxu1 %vm756_vm13, %v930_v55 }
 0x233   :  { %1795 = vmatpush3.bf16.msra.mxu1 %v1792_v54  ;;  %1655 = vmatprep.mubr.msk.f32.mxu1 %vm756_vm13, %v1028_v56 }
 0x234   :  { %1797 = vmatprep.subr.bf16.mxu1 %v1796_v18 }
 0x236   :  { %1656 = vmatmul.mubr.msk.f32.vlgmr.msra.gmra.mrb[12].mxu1 %vm756_vm13, %v1029_v57 }
 0x237   :  { %1799 = vmatpush3.bf16.msra.mxu1 %v1796_v18  ;;  %1662 = vmatprep.mubr.msk.f32.mxu1 %vm756_vm13, %v1026_v58  ;;  %v1211_v18 = vld [vmem:[%s2595_s1 + $0x68] sm:$0xff] }
 0x23e   :  { %1663 = vmatmul.mubr.msk.f32.vlgmr.msra.gmra.mrb[12].mxu1 %vm756_vm13, %v1027_v59 }
 0x23f   :  { %1669 = vmatprep.mubr.msk.f32.mxu1 %vm756_vm13, %v1210_v60 }
 0x305   :  { %v1650_v0 = vpop.f32.mrb[10].mxu1 }
 0x306   :  { %v1021_v3 = vadd.f32 %v1650_v0, %v941_v63  ;;  %v1015_v4 = vpop.f32.mrb[11].mxu1 }
 0x307   :  { %v1016_v5 = vadd.f32 %v1015_v4, %v936_v2 }
 0x308   :  { %v1025_v6 = vmax.f32 %v1021_v3, 0.0 }
 0x309   :  { %v1024_v8 = vmax.f32 %v1016_v5, 0.0 }
 0x30b   :  { %v1804_v9 = vpack.c.bf16 %v1025_v6, %v1024_v8 }
 0x311   :  { %v1664_v10 = vpop.f32.mrb[12].mxu1 }
 0x312   :  { %v1205_v11 = vadd.f32 %v1664_v10, %v1202_v62  ;;  %v1185_v12 = vpop.f32.mrb[13].mxu1 }
 0x313   :  { %v1204_v13 = vadd.f32 %v1197_v61, %v1185_v12 }
 0x314   :  { %v1207_v15 = vmax.f32 %v1205_v11, 0.0 }
 0x315   :  { %v1206_v16 = vmax.f32 %v1204_v13, 0.0 }
 0x317   :  { %v1800_v17 = vpack.c.bf16 %v1207_v15, %v1206_v16 }
 0x319   :  { %1801 = vmatprep.subr.bf16.mxu1 %v1800_v17 }
 0x31a   :  { %1803 = vmatpush3.bf16.msra.mxu1 %v1800_v17 }
 0x31b   :  { %1672 = vmatprep.subr.mxu1 %v2525_v14 }
 0x31d   :  { %1670 = vmatmul.mubr.msk.f32.vlgmr.msra.gmra.mrb[14].mxu1 %vm756_vm13, %v1211_v18 }
 0x31e   :  { %1673 = vmatpush3.msra.mxu1 %v2525_v14  ;;  %1674 = vmatprep.mubr.msk.f32.mxu1 %vm1297_vm15, %v1208_v19  ;;  %v1470_v14 = vpop.permute.xlu0 %1469 }
 0x31f   :  { %1805 = vmatprep.subr.bf16.mxu1 %v1804_v9 }
 0x325   :  { %1675 = vmatmul.mubr.msk.f32.vlgmr.msra.gmra.mrb[14].mxu1 %vm1297_vm15, %v1209_v20 }
 0x326   :  { %1807 = vmatpush3.bf16.msra.mxu1 %v1804_v9  ;;  %1681 = vmatprep.mubr.msk.f32.mxu1 %vm756_vm13, %v1212_v1 }
 0x32d   :  { %1682 = vmatmul.mubr.msk.f32.vlgmr.msra.gmra.mrb[14].mxu1 %vm756_vm13, %v1213_v21 }
 0x400   :  { %v1683_v22 = vpop.f32.mrb[14].mxu1 }
 0x401   :  { %v1473_v24 = vadd.f32 %v1683_v22, %v1470_v14  ;;  %v1451_v25 = vpop.f32.mrb[15].mxu1 }
 0x402   :  { %v1472_v26 = vadd.f32 %v1465_v23, %v1451_v25 }
 0x403   :  { %v1477_v27 = vsel %vm1475_vm7, %v1473_v24, -inf }
 0x404   :  { %v1478_v28 = vmax.f32 %v1472_v26, %v1477_v27 }
 0x406   :  { %v1479_v29 = vrot.slane %v1478_v28, 4 }
 0x408   :  { %v1480_v30 = vmax.f32 %v1478_v28, %v1479_v29 }
 0x40a   :  { %v1481_v31 = vrot.slane %v1480_v30, 2 }
 0x40c   :  { %v1482_v32 = vmax.f32 %v1480_v30, %v1481_v31 }
 0x40e   :  { %v1483_v33 = vrot.slane %v1482_v32, 1 }
 0x410   :  { %v1484_v34 = vmax.f32 %v1482_v32, %v1483_v33 }
 0x412   :  { %v1485_v35 = vsub.f32 %v1472_v26, %v1484_v34  ;;  %v1486_v36 = vsub.f32 %v1477_v27, %v1484_v34 }
 0x414   :  { %v1487_v37 = vmul.f32 1.442695, %v1485_v35  ;;  %v1489_v38 = vmul.f32 1.442695, %v1486_v36 }
 0x416   :  { %1821 = vpow2.f32 %v1487_v37 }
 0x417   :  { %1823 = vpow2.f32 %v1489_v38 }
 0x420   :  { %v1822_v39 = vpop.eup %1821 }
 0x421   :  { %v1824_v7 = vpop.eup %1823 }
 0x422   :  { %v1491_v40 = vadd.f32 %v1824_v7, %v1822_v39 }
 0x424   :  { %v1492_v41 = vrot.slane %v1491_v40, 4 }
 0x426   :  { %v1493_v42 = vadd.f32 %v1492_v41, %v1491_v40 }
 0x428   :  { %v1494_v43 = vrot.slane %v1493_v42, 2 }
 0x42a   :  { %v1495_v44 = vadd.f32 %v1494_v43, %v1493_v42 }
 0x42c   :  { %v1496_v45 = vrot.slane %v1495_v44, 1 }
 0x42e   :  { %v1497_v46 = vadd.f32 %v1496_v45, %v1495_v44 }
 0x430   :  { %1825 = vlog2.f32 %v1497_v46 }
 0x43a   :  { %v1826_v47 = vpop.eup %1825 }
 0x43b   :  { %v1499_v48 = vmul.f32 0.6931472, %v1826_v47 }
 0x43d   :  { %v1500_v49 = vadd.f32 %v1499_v48, %v1484_v34 }
 0x43f   :  { %v1501_v50 = vsub.f32 %v1472_v26, %v1500_v49  ;;  %v1502_v51 = vsub.f32 %v1473_v24, %v1500_v49 }
 0x441   :  { %1503 = vst [vmem:[%s2596_s2] sm:$0xff] %v1501_v50  ;;  %1504 = vst [vmem:[%s2596_s2 + $0x8] sm:$0xff] %v1502_v51 }

</bundles_post_ra>
